<compile_context>
chip_gen: v7x
topology: tpu7x:2x2x1
jax: 0.10.0
libtpu: 0.0.40
codegen_flags: <defaults>
</compile_context>

<pallas_src>
import functools

import jax
import jax.numpy as jnp
from jax.experimental import pallas as pl
from jax.experimental.pallas import tpu as pltpu


# ----------------------------------------------------------------------------
# helpers
# ----------------------------------------------------------------------------
def _round_up(x: int, m: int) -> int:
    return (x + m - 1) // m * m


def _cdiv(a: int, b: int) -> int:
    return (a + b - 1) // b


def _pick_tile(dim_pad: int, cap: int, mult: int = 128) -> int:
    """Largest multiple of `mult` that divides dim_pad and is <= cap."""
    best = mult
    t = mult
    while t <= min(dim_pad, cap):
        if dim_pad % t == 0:
            best = t
        t += mult
    return min(best, dim_pad)


def _vmem_capacity_bytes() -> int:
    try:
        info = pltpu.get_tpu_info()
        cap = int(getattr(info, "vmem_capacity_bytes", 0) or 0)
        if cap > 0:
            return cap
    except Exception:
        pass
    return 64 << 20  # conservative: v7x per-TensorCore VMEM


# ----------------------------------------------------------------------------
# kernels
# ----------------------------------------------------------------------------
def _kernel_weight_resident(x_ref, w_ref, b_ref, o_ref):
    # x_ref: (tm, K_pad) in the activation dtype, w_ref: (K_pad, N_pad) compute
    # dtype (constant block -> DMA'd once per call), b_ref: (1, N_pad) f32.
    acc = jnp.dot(
        x_ref[...].astype(w_ref.dtype),
        w_ref[...],
        preferred_element_type=jnp.float32,
    )
    o_ref[...] = (acc + b_ref[...]).astype(o_ref.dtype)


def _kernel_tiled_f32out(x_ref, w_ref, b_ref, o_ref):
    # f32 output: accumulate directly into the K-resident output block.
    kk = pl.program_id(2)

    @pl.when(kk == 0)
    def _init():
        o_ref[...] = jnp.zeros_like(o_ref)

    o_ref[...] += jnp.dot(
        x_ref[...].astype(w_ref.dtype),
        w_ref[...],
        preferred_element_type=jnp.float32,
    )

    @pl.when(kk == pl.num_programs(2) - 1)
    def _fin():
        o_ref[...] += b_ref[...]


def _kernel_tiled_acc(x_ref, w_ref, b_ref, o_ref, acc_ref):
    # Narrow (non-f32) output: f32 scratch accumulator, cast in the epilogue.
    kk = pl.program_id(2)

    @pl.when(kk == 0)
    def _init():
        acc_ref[...] = jnp.zeros_like(acc_ref)

    acc_ref[...] += jnp.dot(
        x_ref[...].astype(w_ref.dtype),
        w_ref[...],
        preferred_element_type=jnp.float32,
    )

    @pl.when(kk == pl.num_programs(2) - 1)
    def _fin():
        o_ref[...] = (acc_ref[...] + b_ref[...]).astype(o_ref.dtype)


# ----------------------------------------------------------------------------
# forward implementation (jitted; cfg is static via closure)
# ----------------------------------------------------------------------------
def _forward_impl(hidden_states, w_t, b2d, *, cfg):
    *lead, k = hidden_states.shape
    out_dtype = hidden_states.dtype
    x2d = hidden_states.reshape(-1, k)
    m = x2d.shape[0]

    k_pad = cfg["k_pad"]
    n_pad = cfg["n_pad"]
    n = cfg["out_dim"]
    sub = cfg["sub"]
    budget = cfg["budget"]
    vmem_limit = cfg["vmem_limit"]
    w_b = cfg["w_bytes"]
    x_b = jnp.dtype(out_dtype).itemsize
    o_b = x_b

    if cfg["resident"]:
        # ------------------- weight-resident path (no K/N grid) -------------
        fixed = 2 * k_pad * n_pad * w_b + 2 * n_pad * 4          # W + bias bufs
        per_row = 2 * k_pad * x_b + 2 * n_pad * o_b              # x + out bufs
        tm_max = max(sub, ((budget - fixed) // per_row) // sub * sub)
        tm = int(min(_round_up(m, sub), tm_max, 512))
        if _cdiv(m, tm) == 1 and m > sub:
            # give both v7x TensorCores an M tile when the problem allows it
            tm = max(sub, _round_up(_cdiv(m, 2), sub))
        m_pad = _round_up(m, tm)

        if (m_pad, k_pad) != (m, k):
            x2d = jnp.pad(x2d, ((0, m_pad - m), (0, k_pad - k)))

        cost = pl.CostEstimate(
            flops=2 * m_pad * n_pad * k_pad,
            transcendentals=0,
            bytes_accessed=(m_pad * k_pad * x_b + k_pad * n_pad * w_b
                            + n_pad * 4 + m_pad * n_pad * o_b),
        )

        out_p = pl.pallas_call(
            _kernel_weight_resident,
            out_shape=jax.ShapeDtypeStruct((m_pad, n_pad), out_dtype),
            grid_spec=pltpu.PrefetchScalarGridSpec(
                num_scalar_prefetch=0,
                grid=(m_pad // tm,),
                in_specs=[
                    pl.BlockSpec((tm, k_pad), lambda i: (i, 0)),      # x tile
                    pl.BlockSpec((k_pad, n_pad), lambda i: (0, 0)),   # W resident
                    pl.BlockSpec((1, n_pad), lambda i: (0, 0)),       # bias
                ],
                out_specs=pl.BlockSpec((tm, n_pad), lambda i: (i, 0)),
            ),
            compiler_params=pltpu.CompilerParams(
                dimension_semantics=("parallel",),
                vmem_limit_bytes=vmem_limit,
            ),
            cost_estimate=cost,
        )(x2d, w_t, b2d)
    else:
        # ------------------- tiled (M, N, K) fallback path ------------------
        tk = _pick_tile(k_pad, cap=1024)
        tn = _pick_tile(n_pad, cap=512)
        is_f32_out = out_dtype == jnp.float32

        fixed = 2 * tk * tn * w_b + 2 * tn * 4
        per_row = 2 * tk * x_b + 2 * tn * o_b + (0 if is_f32_out else tn * 4)
        tm_max = max(sub, ((budget - fixed) // per_row) // sub * sub)
        tm = int(min(_round_up(m, sub), tm_max, 512))
        if _cdiv(m, tm) * (n_pad // tn) == 1 and m > sub:
            tm = max(sub, _round_up(_cdiv(m, 2), sub))
        m_pad = _round_up(m, tm)

        if (m_pad, k_pad) != (m, k):
            x2d = jnp.pad(x2d, ((0, m_pad - m), (0, k_pad - k)))

        grid = (m_pad // tm, n_pad // tn, k_pad // tk)
        cost = pl.CostEstimate(
            flops=2 * m_pad * n_pad * k_pad,
            transcendentals=0,
            bytes_accessed=(grid[1] * m_pad * k_pad * x_b       # x re-streamed
                            + grid[0] * k_pad * n_pad * w_b     # W re-streamed
                            + grid[0] * n_pad * 4
                            + m_pad * n_pad * o_b),
        )

        kernel = _kernel_tiled_f32out if is_f32_out else _kernel_tiled_acc
        scratch = [] if is_f32_out else [pltpu.VMEM((tm, tn), jnp.float32)]

        out_p = pl.pallas_call(
            kernel,
            out_shape=jax.ShapeDtypeStruct((m_pad, n_pad), out_dtype),
            grid_spec=pltpu.PrefetchScalarGridSpec(
                num_scalar_prefetch=0,
                grid=grid,
                in_specs=[
                    pl.BlockSpec((tm, tk), lambda i, j, kk: (i, kk)),   # x
                    pl.BlockSpec((tk, tn), lambda i, j, kk: (kk, j)),   # W [K,N]
                    pl.BlockSpec((1, tn), lambda i, j, kk: (0, j)),     # bias
                ],
                out_specs=pl.BlockSpec((tm, tn), lambda i, j, kk: (i, j)),
                scratch_shapes=scratch,
            ),
            compiler_params=pltpu.CompilerParams(
                dimension_semantics=("parallel", "parallel", "arbitrary"),
                vmem_limit_bytes=vmem_limit,
            ),
            cost_estimate=cost,
        )(x2d, w_t, b2d)

    out2d = out_p[:m, :n]
    return out2d.reshape(*lead, n)


# ----------------------------------------------------------------------------
# module wrapper (one-time parameter prep outside the hot path)
# ----------------------------------------------------------------------------
class Emb2EmbAdapter:
    """y = hidden_states @ weight.T + bias  (PyTorch nn.Linear semantics)."""

    def __init__(self, weight, bias, compute_dtype=jnp.bfloat16,
                 force_tiled=False):
        out_dim, in_dim = weight.shape
        k_pad = _round_up(in_dim, 128)
        n_pad = _round_up(out_dim, 128)

        # One-time prep: transpose to [K, N] (MXU-native RHS), pad, cast.
        w_t = jnp.asarray(weight).T.astype(compute_dtype)
        if (k_pad, n_pad) != (in_dim, out_dim):
            w_t = jnp.pad(w_t, ((0, k_pad - in_dim), (0, n_pad - out_dim)))
        b = jnp.asarray(bias).astype(jnp.float32)
        if n_pad != out_dim:
            b = jnp.pad(b, (0, n_pad - out_dim))
        self.w_t = w_t
        self.b2d = b.reshape(1, n_pad)

        # Generation-aware VMEM budget (v5e/v6e 128 MiB, v7x 64 MiB physical).
        cap = _vmem_capacity_bytes()
        vmem_limit = min(int(cap * 0.75), 100 << 20)
        budget = int(vmem_limit * 0.85)

        w_bytes = jnp.dtype(compute_dtype).itemsize
        sub = 16 if w_bytes < 4 else 8
        weight_vmem = 2 * k_pad * n_pad * w_bytes  # double-buffered
        resident = (not force_tiled) and weight_vmem <= int(0.6 * budget)

        cfg = dict(
            in_dim=int(in_dim), out_dim=int(out_dim),
            k_pad=int(k_pad), n_pad=int(n_pad),
            sub=int(sub), w_bytes=int(w_bytes),
            budget=int(budget), vmem_limit=int(vmem_limit),
            resident=bool(resident),
        )
        self._fwd = jax.jit(functools.partial(_forward_impl, cfg=cfg))

    def __call__(self, hidden_states):
        return self._fwd(hidden_states, self.w_t, self.b2d)


def init_params(key, input_dim, output_dim, dtype=jnp.float32):
    """nn.Linear-style init: U(-1/sqrt(in), 1/sqrt(in))."""
    kw, kb = jax.random.split(key)
    bound = 1.0 / jnp.sqrt(jnp.float32(input_dim))
    weight = jax.random.uniform(
        kw, (output_dim, input_dim), dtype=dtype, minval=-bound, maxval=bound)
    bias = jax.random.uniform(
        kb, (output_dim,), dtype=dtype, minval=-bound, maxval=bound)
    return weight, bias


if __name__ == "__main__":
    key = jax.random.PRNGKey(0)

    # --- Test 1: small shapes, f32 compute, weight-resident path -------------
    k1, k2, key = jax.random.split(key, 3)
    batch, seq, in_dim, out_dim = 2, 8, 32, 64
    hs = jax.random.normal(k1, (batch, seq, in_dim), dtype=jnp.float32)
    w, b = init_params(k2, in_dim, out_dim)
    adapter = Emb2EmbAdapter(w, b, compute_dtype=jnp.float32)
    out = jax.block_until_ready(adapter(hs))
    ref = hs @ w.T + b
    assert out.shape == (batch, seq, out_dim)
    rel1 = jnp.max(jnp.abs(out - ref)) / jnp.max(jnp.abs(ref))
    assert rel1 < 1e-2, f"f32 resident path rel err {rel1}"

    # --- Test 2: multi-tile M, bf16 compute, weight-resident path ------------
    k1, k2, key = jax.random.split(key, 3)
    b2, s2, in2, out2d = 2, 256, 384, 256
    hs2 = jax.random.normal(k1, (b2, s2, in2), dtype=jnp.float32)
    w2, bv2 = init_params(k2, in2, out2d)
    adapter2 = Emb2EmbAdapter(w2, bv2)  # default bf16 compute
    out2 = jax.block_until_ready(adapter2(hs2))
    ref2 = hs2 @ w2.T + bv2
    assert out2.shape == (b2, s2, out2d)
    rel2 = jnp.max(jnp.abs(out2 - ref2)) / jnp.max(jnp.abs(ref2))
    assert rel2 < 2e-2, f"bf16 resident path rel err {rel2}"

    # --- Test 3: tiled (M,N,K) fallback with K-axis accumulation -------------
    k1, k2, key = jax.random.split(key, 3)
    b3, s3, in3, out3d = 2, 256, 1536, 512
    hs3 = jax.random.normal(k1, (b3, s3, in3), dtype=jnp.float32)
    w3, bv3 = init_params(k2, in3, out3d)
    adapter3 = Emb2EmbAdapter(w3, bv3, force_tiled=True)
    out3 = jax.block_until_ready(adapter3(hs3))
    ref3 = hs3 @ w3.T + bv3
    assert out3.shape == (b3, s3, out3d)
    rel3 = jnp.max(jnp.abs(out3 - ref3)) / jnp.max(jnp.abs(ref3))
    assert rel3 < 2e-2, f"tiled path rel err {rel3}"

    print("KERNEL_OK")
</pallas_src>

<mosaic_0001>
module attributes {stable_mosaic.version = 11 : i64} {
  func.func @_kernel_weight_resident(%arg0: i32, %arg1: memref<8x128xf32, #tpu.memory_space<vmem>>, %arg2: memref<128x128xf32, #tpu.memory_space<vmem>>, %arg3: memref<1x128xf32, #tpu.memory_space<vmem>>, %arg4: memref<8x128xf32, #tpu.memory_space<vmem>>) attributes {dimension_semantics = [#tpu.dimension_semantics<parallel>], iteration_bounds = array<i64: 2>, scalar_prefetch = 0 : i64, scratch_operands = 0 : i64, tpu.core_type = #tpu.core_type<tc>, window_params = [{transform_indices = @transform_0, window_bounds = array<i64: 8, 128>}, {pipeline_mode = #tpu.pipeline_mode<synchronous>, transform_indices = @transform_1, window_bounds = array<i64: 128, 128>}, {pipeline_mode = #tpu.pipeline_mode<synchronous>, transform_indices = @transform_2, window_bounds = array<i64: 1, 128>}, {transform_indices = @transform_3, window_bounds = array<i64: 8, 128>}]} {
    %c0 = arith.constant 0 : index
    %c0_0 = arith.constant 0 : index
    %0 = vector.load %arg1[%c0, %c0_0] : memref<8x128xf32, #tpu.memory_space<vmem>>, vector<8x128xf32>
    %c0_1 = arith.constant 0 : index
    %c0_2 = arith.constant 0 : index
    %1 = vector.load %arg2[%c0_1, %c0_2] : memref<128x128xf32, #tpu.memory_space<vmem>>, vector<128x128xf32>
    %cst = arith.constant dense<0.000000e+00> : vector<8x128xf32>
    %2 = tpu.matmul %0, %1, %cst {dimension_numbers = #tpu.dot_dimension_numbers<[1], [0], [0], [1], [0, 0, 1, 1], [], []>} : vector<8x128xf32>, vector<128x128xf32>, vector<8x128xf32> -> vector<8x128xf32>
    %c0_3 = arith.constant 0 : index
    %c0_4 = arith.constant 0 : index
    %3 = vector.load %arg3[%c0_3, %c0_4] : memref<1x128xf32, #tpu.memory_space<vmem>>, vector<1x128xf32>
    %4 = vector.broadcast %3 : vector<1x128xf32> to vector<8x128xf32>
    %5 = arith.addf %2, %4 : vector<8x128xf32>
    %c0_5 = arith.constant 0 : index
    %c0_6 = arith.constant 0 : index
    %6 = vector.load %arg4[%c0_5, %c0_6] : memref<8x128xf32, #tpu.memory_space<vmem>>, vector<8x128xf32>
    tpu.vector_store %arg4[%c0_5, %c0_6], %5 {strides = array<i32>} : memref<8x128xf32, #tpu.memory_space<vmem>>, vector<8x128xf32>,
    return
  }
  func.func @transform_0(%arg0: i32) -> (i32, i32) {
    %c0_i32 = arith.constant 0 : i32
    %c0_i32_0 = arith.constant 0 : i32
    return %arg0, %c0_i32 : i32, i32
  }
  func.func @transform_1(%arg0: i32) -> (i32, i32) {
    %c0_i32 = arith.constant 0 : i32
    %c0_i32_0 = arith.constant 0 : i32
    %c0_i32_1 = arith.constant 0 : i32
    return %c0_i32, %c0_i32_0 : i32, i32
  }
  func.func @transform_2(%arg0: i32) -> (i32, i32) {
    %c0_i32 = arith.constant 0 : i32
    %c0_i32_0 = arith.constant 0 : i32
    %c0_i32_1 = arith.constant 0 : i32
    return %c0_i32, %c0_i32_0 : i32, i32
  }
  func.func @transform_3(%arg0: i32) -> (i32, i32) {
    %c0_i32 = arith.constant 0 : i32
    %c0_i32_0 = arith.constant 0 : i32
    return %arg0, %c0_i32 : i32, i32
  }
}

</mosaic_0001>

<bundles_post_ra>
// kernel: _forward_impl.1
= control target key start
LH: loop header
LB: loop body
LE: loop exit
PB: predicated region body
PF: predicated region fallthrough
CT: control target
= control target key end

     0   :  { %8 = vsyncpa [#allocation3], 0  ;;  %s519_s12 = smov 0   ;;  %s578_s0 = inlined_call_operand.vmem [shape: f32[16,128], index: 0, kind: input, shape index: {}]   ;;  %s579_s1 = inlined_call_operand.hbm [shape: f32[128,128], index: 1, kind: input, shape index: {}]   ;;  %s580_s2 = inlined_call_operand.vmem [shape: f32[1,128], index: 2, kind: input, shape index: {}]   ;;  %s581_s3 = inlined_call_operand.vmem [shape: f32[16,128], index: 3, kind: output, shape index: {}]  }
   0x1 LB: > { %s525_s13 = sadd.s32 4294967295, %s491_s12   ;;  %p343_p0 = scmp.ge.s32.totalorder %s491_s12, 1  ;;  %s491_s12 = sphi %s519_s12, %s14_s12  }
   0x2   : > { %p113_p1 = scmp.lt.s32.totalorder %s491_s12, 3  ;;  %s493_s14 = smov [#allocation2]  }
   0x3   : > { %s125_s15 = sshll.u32 %s493_s14, 4  ;;  %p582_p3 = scmp.eq.s32.totalorder %s525_s13, 0  ;;  %s126_s15 = int_to_ptr.vmem [resolvable:$true] %s125_s15 }
   0x4   : > { %p529_p2 = pnand %p343_p0, %p113_p1  ;;  %s453_s20 = scalar_lea.hbm %s579_s1, 2048 }
   0x5   : > { %p454_p6 = scmp.ne.s32.totalorder %s579_s1, %s453_s20  ;;  %p460_p10 = scmp.lt.u32.totalorder %s453_s20, %s579_s1 }
   0x6   : > { %s584_s16 = scalar_select %p529_p2, 1, 0 }
   0x7   : > { %p433_p4 = pneg %p529_p2 }
   0x9   : > { %p538_p5 = pnand %p582_p3, %p433_p4 }
   0xb   : > { %p455_p7 = pneg %p538_p5 }
   0xd   : > { %p456_p8 = pnand %p455_p7, %p454_p6 }
   0xf   : > { %p457_p9 = pneg %p456_p8 }
  0x11   : > { %p462_p11 = pnand %p460_p10, %p457_p9 }
  0x13   : > { %465 = shalt.err (!%p462_p11)
}
  0x14   : > { %s466_s25 = scalar_lea.vmem %s126_s15, 2048  ;;  %p474_p1 = scmp.lt.s32.totalorder %s126_s15, %s126_s15 }
  0x15   : > { %p467_p12 = scmp.ne.s32.totalorder %s126_s15, %s466_s25  ;;  %p475_p4 = scmp.lt.s32.totalorder %s466_s25, %s466_s25 }
  0x17   : > { %p469_p13 = pnand %p467_p12, %p455_p7  ;;  %p476_p3 = por %p475_p4, %p474_p1 }
  0x19   : > { %p470_p0 = pneg %p469_p13 }
  0x1b   : > { %p477_p2 = pnand %p476_p3, %p470_p0 }
  0x1d   : > { %480 = shalt.err (!%p477_p2)
}
  0x1e   : > { %s494_s26 = smov 128   ;;  %s495_s27 = smov 8  }
  0x1f   : > { %436 = dma.hbm_to_vmem [thread:$0]  (!%p538_p5), %s579_s1, 2048, %s126_s15, [#allocation3], %s494_s26, %s494_s26, %s495_s27  }
  0x20   : > { %p586_p6 = scmp.ne.s32.totalorder %s584_s16, 0 }
  0x21   : > { %p587_p8 = scmp.eq.s32.totalorder (!%p586_p6), %s525_s13, 0 }
  0x22   : > { %151 = sbr.rel (%p586_p6) target bundleno = 291 (0x123), region = 32 }
  0x29   : > { %486 = dma.done.wait (%p587_p8), [#allocation3], 2048   ;;  %p588_p7 = pmov %p587_p8 }
  0x2a   : > { %v496_v0 = vmov 0.0|0.0   ;;  %vm497_vm0 = vmmov 0   ;;  %v498_v1 = vmov 0.0   ;;  %v182_v2 = vld [vmem:[#allocation2] sm:$0xff]  ;;  %v183_v3 = vld [vmem:[#allocation2 + $0x8] sm:$0xff]  ;;  %v184_v4 = vld [vmem:[#allocation2 + $0x10] sm:$0xff] }
  0x2b   : > { %488 = vsyncadd (%p588_p7), [#allocation3], 4294965248  ;;  %405 = vmatprep.subr.bf16.mxu0 %v496_v0  ;;  %402 = vmatprep.mubr.msk.f32.mxu0 %vm497_vm0, %v498_v1  ;;  %v406_v5 = vpack.c.bf16 %v183_v3, %v182_v2  ;;  %v185_v6 = vld [vmem:[#allocation2 + $0x18] sm:$0xff]  ;;  %v186_v8 = vld [vmem:[#allocation2 + $0x20] sm:$0xff]  ;;  %p173_p2 = scmp.lt.s32.totalorder %s525_s13, 1 }
  0x2c   : > { %v409_v7 = vpack.c.bf16 %v185_v6, %v184_v4  ;;  %v187_v9 = vld [vmem:[#allocation2 + $0x28] sm:$0xff]  ;;  %v188_v11 = vld [vmem:[#allocation2 + $0x30] sm:$0xff]  ;;  %v189_v12 = vld [vmem:[#allocation2 + $0x38] sm:$0xff] }
  0x2d   : > { %407 = vmatpush3.bf16.msra.mxu0 %v406_v5  ;;  %v412_v10 = vpack.c.bf16 %v187_v9, %v186_v8  ;;  %v415_v13 = vpack.c.bf16 %v189_v12, %v188_v11  ;;  %v190_v14 = vld [vmem:[#allocation2 + $0x40] sm:$0xff]  ;;  %v191_v15 = vld [vmem:[#allocation2 + $0x48] sm:$0xff]  ;;  %v192_v17 = vld [vmem:[#allocation2 + $0x50] sm:$0xff]  ;;  %s590_s13 = smov (!%p173_p2, %s525_s13), 1 }
  0x2e   : > { %408 = vmatprep.subr.bf16.mxu0 %v496_v0  ;;  %v418_v16 = vpack.c.bf16 %v191_v15, %v190_v14  ;;  %v193_v18 = vld [vmem:[#allocation2 + $0x58] sm:$0xff]  ;;  %v194_v20 = vld [vmem:[#allocation2 + $0x60] sm:$0xff]  ;;  %v195_v21 = vld [vmem:[#allocation2 + $0x68] sm:$0xff]  ;;  %s348_s30 = sshll.u32 %s590_s13, 3 }
  0x2f   : > { %v421_v19 = vpack.c.bf16 %v193_v18, %v192_v17  ;;  %v424_v22 = vpack.c.bf16 %v195_v21, %v194_v20  ;;  %v196_v23 = vld [vmem:[#allocation2 + $0x70] sm:$0xff]  ;;  %v197_v24 = vld [vmem:[#allocation2 + $0x78] sm:$0xff]  ;;  %s176_s6 = scalar_lea.vmem %s578_s0, %s348_s30  ;;  %v350_v27 = vld [vmem:[%s580_s2] ss:$0 sm:$0xff]  ;;  %s180_s11 = scalar_lea.vmem %s581_s3, %s348_s30 }
  0x30   : > { %v427_v25 = vpack.c.bf16 %v197_v24, %v196_v23  ;;  %v181_v26 = vld [vmem:[%s176_s6] sm:$0xff] }
  0x31   : > { %410 = vmatpush3.bf16.msra.mxu0 %v409_v7 }
  0x32   : > { %411 = vmatprep.subr.bf16.mxu0 %v496_v0 }
  0x35   : > { %413 = vmatpush3.bf16.msra.mxu0 %v412_v10 }
  0x36   : > { %414 = vmatprep.subr.bf16.mxu0 %v496_v0 }
  0x39   : > { %416 = vmatpush3.bf16.msra.mxu0 %v415_v13 }
  0x3a   : > { %417 = vmatprep.subr.bf16.mxu0 %v496_v0 }
  0x3d   : > { %419 = vmatpush3.bf16.msra.mxu0 %v418_v16 }
  0x3e   : > { %420 = vmatprep.subr.bf16.mxu0 %v496_v0 }
  0x41   : > { %422 = vmatpush3.bf16.msra.mxu0 %v421_v19 }
  0x42   : > { %423 = vmatprep.subr.bf16.mxu0 %v496_v0 }
  0x45   : > { %425 = vmatpush3.bf16.msra.mxu0 %v424_v22 }
  0x46   : > { %426 = vmatprep.subr.bf16.mxu0 %v496_v0 }
  0x49   : > { %428 = vmatpush3.bf16.msra.mxu0 %v427_v25 }
  0x4c   : > { %403 = vmatmul.mubr.f32.vlgmr.msra.gmra.mrb[0].mxu0 %v181_v26 }
 0x11f   : > { %v271_v28 = vpop.f32.mrb[0].mxu0 }
 0x120   : > { %v272_v29 = vadd.f32 %v350_v27, %v271_v28  ;;  %v404_v30 = vpop.f32.mrb[1].mxu0 }
 0x122   : > { %275 = vst [vmem:[%s180_s11] sm:$0xff] %v272_v29 }
 0x123 PF: > { %s14_s12 = sadd.s32 1, %s491_s12  }
 0x124   : > { %p11_p3 = scmp.ge.s32.totalorder %s14_s12, 4  }
 0x126   :  { %13 = sbr.rel (!%p11_p3) target bundleno = 1 (0x1), region = 67 }
 0x12d   :  { %295 = vsyncpa [#allocation3], 1 }
 0x12e   :  { %297 = vsyncpa [#allocation3 + $0x1], 1 }

</bundles_post_ra>
